<compile_context>
chip_gen: v7x
topology: tpu7x:2x2x1
jax: 0.10.0
libtpu: 0.0.40
codegen_flags: <defaults>
</compile_context>

<pallas_src>
import functools

import jax
import jax.numpy as jnp
from jax.experimental import pallas as pl
from jax.experimental.pallas import tpu as pltpu


def _dyrelu_coefs_kernel(x_ref, w1_ref, b1_ref, w2_ref, b2_ref, out_ref,
                         acc_ref, *, inv_hw):
    """One grid step: reduce a (block_n, C, chunk) tile of x into acc_ref.

    Grid = (row blocks over N, spatial chunks over H*W).  The spatial axis is
    the reduction axis; the tiny fc1/fc2/sigmoid chain runs once per row block
    in the last-chunk epilogue.
    """
    j = pl.program_id(1)

    @pl.when(j == 0)
    def _init():
        acc_ref[...] = jnp.zeros_like(acc_ref)

    # Lane-dense single-pass reduction over the flattened spatial axis.
    x = x_ref[...].astype(jnp.float32)              # (block_n, C, chunk)
    acc_ref[...] += jnp.sum(x, axis=-1)             # (block_n, C)

    @pl.when(j == pl.num_programs(1) - 1)
    def _epilogue():
        theta = acc_ref[...] * inv_hw               # spatial mean
        h = jnp.dot(theta, w1_ref[...], preferred_element_type=jnp.float32)
        h = jnp.maximum(h + b1_ref[...], 0.0)       # fc1 + ReLU
        t = jnp.dot(h, w2_ref[...], preferred_element_type=jnp.float32)
        t = t + b2_ref[...]                         # fc2
        out_ref[...] = (2.0 * jax.nn.sigmoid(t) - 1.0).astype(out_ref.dtype)


def _pick_block_n(n):
    # Second-to-last dim of the output / accumulator block must be a multiple
    # of 8 or equal the full batch dim.
    if n % 8 == 0:
        return 8
    return n


def _pick_spatial_chunk(hw, row_bytes, target_bytes=4 << 20):
    # Largest lane-dense (multiple-of-128) chunk that divides H*W and keeps a
    # block around ~4 MiB (fits v7x double-buffering with headroom).
    if hw % 128 != 0:
        return hw                      # full axis (block == array dim allowed)
    budget = max(128, ((target_bytes // max(row_bytes, 1)) // 128) * 128)
    best = 128
    m = 128
    while m <= min(hw, budget):
        if hw % m == 0:
            best = m
        m += 128
    return best


@functools.partial(jax.jit, static_argnames=("spatial_chunk", "block_n"))
def dyrelu_get_relu_coefs(x, w1_t, b1, w2_t, b2, *, spatial_chunk=None,
                          block_n=None):
    """DyReLU.get_relu_coefs (conv_type='2d') fused into one Pallas kernel.

    x:    (N, C, H, W) float32 (bf16 also fine; summed in f32)
    w1_t: (C, hidden)   b1: (1, hidden)
    w2_t: (hidden, 2k)  b2: (1, 2k)
    returns theta: (N, 2k) float32
    """
    N, C, H, W = x.shape
    hw = H * W
    hidden = w1_t.shape[1]
    two_k = w2_t.shape[1]

    # Flatten spatial dims -> lane-dense last axis.
    x3 = x.reshape(N, C, hw)

    if block_n is None:
        block_n = _pick_block_n(N)
    if spatial_chunk is None:
        spatial_chunk = _pick_spatial_chunk(hw, block_n * C * x3.dtype.itemsize)
    assert N % block_n == 0 and hw % spatial_chunk == 0

    grid = (N // block_n, hw // spatial_chunk)
    kernel = functools.partial(_dyrelu_coefs_kernel, inv_hw=1.0 / float(hw))

    grid_spec = pltpu.PrefetchScalarGridSpec(
        num_scalar_prefetch=0,
        grid=grid,
        in_specs=[
            # Streamed, double-buffered x tiles (lane-dense last dim).
            pl.BlockSpec((block_n, C, spatial_chunk), lambda i, j: (i, 0, j)),
            # Tiny weights/biases: constant block index -> DMA'd once, resident.
            pl.BlockSpec((C, hidden), lambda i, j: (0, 0)),
            pl.BlockSpec((1, hidden), lambda i, j: (0, 0)),
            pl.BlockSpec((hidden, two_k), lambda i, j: (0, 0)),
            pl.BlockSpec((1, two_k), lambda i, j: (0, 0)),
        ],
        out_specs=pl.BlockSpec((block_n, two_k), lambda i, j: (i, 0)),
        scratch_shapes=[pltpu.VMEM((block_n, C), jnp.float32)],
    )

    return pl.pallas_call(
        kernel,
        out_shape=jax.ShapeDtypeStruct((N, two_k), jnp.float32),
        grid_spec=grid_spec,
        compiler_params=pltpu.CompilerParams(
            # Row-block axis shards across v7x's two TensorCores; the spatial
            # reduction axis must stay "arbitrary" and last.
            dimension_semantics=("parallel", "arbitrary"),
            vmem_limit_bytes=32 * 1024 * 1024,
        ),
    )(x3, w1_t, b1, w2_t, b2)


def init_dyrelu_params(key, channels, reduction=4, k=2):
    """Deterministic init mimicking torch.nn.Linear default U(-1/sqrt(fan_in), +)."""
    hidden = channels // reduction
    two_k = 2 * k
    k1, k2, k3, k4 = jax.random.split(key, 4)

    bound1 = 1.0 / jnp.sqrt(channels)
    w1 = jax.random.uniform(k1, (hidden, channels), jnp.float32, -bound1, bound1)
    b1 = jax.random.uniform(k2, (hidden,), jnp.float32, -bound1, bound1)

    bound2 = 1.0 / jnp.sqrt(hidden)
    w2 = jax.random.uniform(k3, (two_k, hidden), jnp.float32, -bound2, bound2)
    b2 = jax.random.uniform(k4, (two_k,), jnp.float32, -bound2, bound2)

    # Buffers (unused by get_relu_coefs, kept for parity with the module).
    lambdas = jnp.concatenate([jnp.ones((k,)), 0.5 * jnp.ones((k,))]).astype(jnp.float32)
    init_v = jnp.concatenate([jnp.ones((1,)), jnp.zeros((two_k - 1,))]).astype(jnp.float32)

    # Pre-transpose weights for the kernel; biases as 2D row vectors.
    return {
        "w1_t": w1.T,                # (channels, hidden)
        "b1": b1.reshape(1, hidden),
        "w2_t": w2.T,                # (hidden, 2k)
        "b2": b2.reshape(1, two_k),
        "lambdas": lambdas,
        "init_v": init_v,
    }


def _reference_coefs(x, params):
    theta = jnp.mean(x, axis=-1)
    theta = jnp.mean(theta, axis=-1)
    h = jnp.maximum(theta @ params["w1_t"] + params["b1"], 0.0)
    t = h @ params["w2_t"] + params["b2"]
    return 2.0 * jax.nn.sigmoid(t) - 1.0


if __name__ == "__main__":
    key = jax.random.PRNGKey(0)
    k_x, k_p = jax.random.split(key)

    # Small shapes: batch=2, channels=8 (reduction=4 -> hidden=2), 16x16, k=2.
    N, C, H, W = 2, 8, 16, 16
    x = jax.random.normal(k_x, (N, C, H, W), dtype=jnp.float32)

    params = init_dyrelu_params(k_p, channels=C, reduction=4, k=2)

    # spatial_chunk=128 forces two reduction steps on these small shapes so the
    # accumulator init / epilogue path is exercised.
    theta = dyrelu_get_relu_coefs(
        x, params["w1_t"], params["b1"], params["w2_t"], params["b2"],
        spatial_chunk=128,
    )
    theta = jax.block_until_ready(theta)

    ref = _reference_coefs(x, params)
    assert theta.shape == (N, 4)
    assert jnp.allclose(theta, ref, atol=1e-5, rtol=1e-5)

    print("KERNEL_OK")
</pallas_src>

<mosaic_0001>
module attributes {stable_mosaic.version = 11 : i64} {
  func.func @_dyrelu_coefs_kernel(%arg0: i32, %arg1: i32, %arg2: memref<2x8x128xf32, #tpu.memory_space<vmem>>, %arg3: memref<8x2xf32, #tpu.memory_space<vmem>>, %arg4: memref<1x2xf32, #tpu.memory_space<vmem>>, %arg5: memref<2x4xf32, #tpu.memory_space<vmem>>, %arg6: memref<1x4xf32, #tpu.memory_space<vmem>>, %arg7: memref<2x4xf32, #tpu.memory_space<vmem>>, %arg8: memref<2x8xf32, #tpu.memory_space<vmem>>) attributes {dimension_semantics = [#tpu.dimension_semantics<parallel>, #tpu.dimension_semantics<arbitrary>], iteration_bounds = array<i64: 1, 2>, scalar_prefetch = 0 : i64, scratch_operands = 1 : i64, tpu.core_type = #tpu.core_type<tc>, window_params = [{transform_indices = @transform_0, window_bounds = array<i64: 2, 8, 128>}, {pipeline_mode = #tpu.pipeline_mode<synchronous>, transform_indices = @transform_1, window_bounds = array<i64: 8, 2>}, {pipeline_mode = #tpu.pipeline_mode<synchronous>, transform_indices = @transform_2, window_bounds = array<i64: 1, 2>}, {pipeline_mode = #tpu.pipeline_mode<synchronous>, transform_indices = @transform_3, window_bounds = array<i64: 2, 4>}, {pipeline_mode = #tpu.pipeline_mode<synchronous>, transform_indices = @transform_4, window_bounds = array<i64: 1, 4>}, {transform_indices = @transform_5, window_bounds = array<i64: 2, 4>}]} {
    %c0_i32 = arith.constant 0 : i32
    %0 = arith.cmpi eq, %arg1, %c0_i32 : i32
    %1 = arith.extui %0 : i1 to i32
    %c0_i32_0 = arith.constant 0 : i32
    %2 = arith.cmpi ne, %1, %c0_i32_0 : i32
    scf.if %2 {
      %cst_8 = arith.constant 0.000000e+00 : f32
      %11 = vector.broadcast %cst_8 : f32 to vector<2x8xf32>
      %c0_9 = arith.constant 0 : index
      %c0_10 = arith.constant 0 : index
      %12 = vector.load %arg8[%c0_9, %c0_10] : memref<2x8xf32, #tpu.memory_space<vmem>>, vector<2x8xf32>
      tpu.vector_store %arg8[%c0_9, %c0_10], %11 {strides = array<i32>} : memref<2x8xf32, #tpu.memory_space<vmem>>, vector<2x8xf32>,
    } else {
    }
    %c0 = arith.constant 0 : index
    %c0_1 = arith.constant 0 : index
    %c0_2 = arith.constant 0 : index
    %3 = vector.load %arg2[%c0, %c0_1, %c0_2] : memref<2x8x128xf32, #tpu.memory_space<vmem>>, vector<2x8x128xf32>
    %c0_3 = arith.constant 0 : index
    %c0_4 = arith.constant 0 : index
    %4 = vector.load %arg8[%c0_3, %c0_4] : memref<2x8xf32, #tpu.memory_space<vmem>>, vector<2x8xf32>
    %cst = arith.constant dense<0.000000e+00> : vector<2x8xf32>
    %5 = vector.multi_reduction <add>, %3, %cst [2] : vector<2x8x128xf32> to vector<2x8xf32>
    %6 = arith.addf %4, %5 : vector<2x8xf32>
    %c0_5 = arith.constant 0 : index
    %c0_6 = arith.constant 0 : index
    %7 = vector.load %arg8[%c0_5, %c0_6] : memref<2x8xf32, #tpu.memory_space<vmem>>, vector<2x8xf32>
    tpu.vector_store %arg8[%c0_5, %c0_6], %6 {strides = array<i32>} : memref<2x8xf32, #tpu.memory_space<vmem>>, vector<2x8xf32>,
    %c1_i32 = arith.constant 1 : i32
    %8 = arith.cmpi eq, %arg1, %c1_i32 : i32
    %9 = arith.extui %8 : i1 to i32
    %c0_i32_7 = arith.constant 0 : i32
    %10 = arith.cmpi ne, %9, %c0_i32_7 : i32
    scf.if %10 {
      %c0_8 = arith.constant 0 : index
      %c0_9 = arith.constant 0 : index
      %11 = vector.load %arg8[%c0_8, %c0_9] : memref<2x8xf32, #tpu.memory_space<vmem>>, vector<2x8xf32>
      %cst_10 = arith.constant 3.906250e-03 : f32
      %12 = vector.broadcast %cst_10 : f32 to vector<2x8xf32>
      %13 = arith.mulf %11, %12 : vector<2x8xf32>
      %c0_11 = arith.constant 0 : index
      %c0_12 = arith.constant 0 : index
      %14 = vector.load %arg3[%c0_11, %c0_12] : memref<8x2xf32, #tpu.memory_space<vmem>>, vector<8x2xf32>
      %cst_13 = arith.constant dense<0.000000e+00> : vector<2x2xf32>
      %15 = tpu.matmul %13, %14, %cst_13 {dimension_numbers = #tpu.dot_dimension_numbers<[1], [0], [0], [1], [0, 0, 1, 1], [], []>} : vector<2x8xf32>, vector<8x2xf32>, vector<2x2xf32> -> vector<2x2xf32>
      %c0_14 = arith.constant 0 : index
      %c0_15 = arith.constant 0 : index
      %16 = vector.load %arg4[%c0_14, %c0_15] : memref<1x2xf32, #tpu.memory_space<vmem>>, vector<1x2xf32>
      %17 = vector.broadcast %16 : vector<1x2xf32> to vector<2x2xf32>
      %18 = arith.addf %15, %17 : vector<2x2xf32>
      %cst_16 = arith.constant 0.000000e+00 : f32
      %19 = vector.broadcast %cst_16 : f32 to vector<2x2xf32>
      %20 = arith.maximumf %18, %19 : vector<2x2xf32>
      %c0_17 = arith.constant 0 : index
      %c0_18 = arith.constant 0 : index
      %21 = vector.load %arg5[%c0_17, %c0_18] : memref<2x4xf32, #tpu.memory_space<vmem>>, vector<2x4xf32>
      %cst_19 = arith.constant dense<0.000000e+00> : vector<2x4xf32>
      %22 = tpu.matmul %20, %21, %cst_19 {dimension_numbers = #tpu.dot_dimension_numbers<[1], [0], [0], [1], [0, 0, 1, 1], [], []>} : vector<2x2xf32>, vector<2x4xf32>, vector<2x4xf32> -> vector<2x4xf32>
      %c0_20 = arith.constant 0 : index
      %c0_21 = arith.constant 0 : index
      %23 = vector.load %arg6[%c0_20, %c0_21] : memref<1x4xf32, #tpu.memory_space<vmem>>, vector<1x4xf32>
      %24 = vector.broadcast %23 : vector<1x4xf32> to vector<2x4xf32>
      %25 = arith.addf %22, %24 : vector<2x4xf32>
      %26 = arith.negf %25 : vector<2x4xf32>
      %27 = math.exp %26 : vector<2x4xf32>
      %cst_22 = arith.constant 1.000000e+00 : f32
      %28 = vector.broadcast %cst_22 : f32 to vector<2x4xf32>
      %29 = arith.addf %28, %27 : vector<2x4xf32>
      %30 = arith.divf %28, %29 : vector<2x4xf32>
      %cst_23 = arith.constant 2.000000e+00 : f32
      %31 = vector.broadcast %cst_23 : f32 to vector<2x4xf32>
      %32 = arith.mulf %31, %30 : vector<2x4xf32>
      %cst_24 = arith.constant 1.000000e+00 : f32
      %33 = vector.broadcast %cst_24 : f32 to vector<2x4xf32>
      %34 = arith.subf %32, %33 : vector<2x4xf32>
      %c0_25 = arith.constant 0 : index
      %c0_26 = arith.constant 0 : index
      %35 = vector.load %arg7[%c0_25, %c0_26] : memref<2x4xf32, #tpu.memory_space<vmem>>, vector<2x4xf32>
      tpu.vector_store %arg7[%c0_25, %c0_26], %34 {strides = array<i32>} : memref<2x4xf32, #tpu.memory_space<vmem>>, vector<2x4xf32>,
    } else {
    }
    return
  }
  func.func @transform_0(%arg0: i32, %arg1: i32) -> (i32, i32, i32) {
    %c0_i32 = arith.constant 0 : i32
    %c0_i32_0 = arith.constant 0 : i32
    return %arg0, %c0_i32, %arg1 : i32, i32, i32
  }
  func.func @transform_1(%arg0: i32, %arg1: i32) -> (i32, i32) {
    %c0_i32 = arith.constant 0 : i32
    %c0_i32_0 = arith.constant 0 : i32
    %c0_i32_1 = arith.constant 0 : i32
    return %c0_i32, %c0_i32_0 : i32, i32
  }
  func.func @transform_2(%arg0: i32, %arg1: i32) -> (i32, i32) {
    %c0_i32 = arith.constant 0 : i32
    %c0_i32_0 = arith.constant 0 : i32
    %c0_i32_1 = arith.constant 0 : i32
    return %c0_i32, %c0_i32_0 : i32, i32
  }
  func.func @transform_3(%arg0: i32, %arg1: i32) -> (i32, i32) {
    %c0_i32 = arith.constant 0 : i32
    %c0_i32_0 = arith.constant 0 : i32
    %c0_i32_1 = arith.constant 0 : i32
    return %c0_i32, %c0_i32_0 : i32, i32
  }
  func.func @transform_4(%arg0: i32, %arg1: i32) -> (i32, i32) {
    %c0_i32 = arith.constant 0 : i32
    %c0_i32_0 = arith.constant 0 : i32
    %c0_i32_1 = arith.constant 0 : i32
    return %c0_i32, %c0_i32_0 : i32, i32
  }
  func.func @transform_5(%arg0: i32, %arg1: i32) -> (i32, i32) {
    %c0_i32 = arith.constant 0 : i32
    %c0_i32_0 = arith.constant 0 : i32
    return %arg0, %c0_i32 : i32, i32
  }
}

</mosaic_0001>

<bundles_post_ra>
// kernel: dyrelu_get_relu_coefs.1
= control target key start
LH: loop header
LB: loop body
LE: loop exit
PB: predicated region body
PF: predicated region fallthrough
CT: control target
= control target key end

     0   :  { %10 = vsyncpa [#allocation5], 0  ;;  %s747_s18 = smov 0   ;;  %s749_s19 = smov 0   ;;  %s851_s0 = inlined_call_operand.vmem [shape: f32[2,8,256], index: 0, kind: input, shape index: {}]   ;;  %s852_s1 = inlined_call_operand.vmem [shape: f32[8,2], index: 1, kind: input, shape index: {}]   ;;  %s853_s2 = inlined_call_operand.vmem [shape: f32[1,2], index: 2, kind: input, shape index: {}]   ;;  %s854_s3 = inlined_call_operand.vmem [shape: f32[2,4], index: 3, kind: input, shape index: {}]   ;;  %s855_s4 = inlined_call_operand.vmem [shape: f32[1,4], index: 4, kind: input, shape index: {}]   ;;  %s856_s5 = inlined_call_operand.hbm [shape: f32[2,4], index: 5, kind: output, shape index: {}]  }
   0x1   :  { %s751_s20 = smov 0   ;;  %s753_s21 = smov 0  }
   0x2   :  { %s755_s22 = smov 0  }
   0x3 LB: > { %s555_s23 = sadd.s32 4294967295, %s711_s22   ;;  %s25_s24 = sadd.s32 1, %s707_s21  ;;  %s711_s22 = sphi %s755_s22, %s16_s22   ;;  %s707_s21 = sphi %s753_s21, %s861_s21   ;;  %s703_s20 = sphi %s751_s20, %s860_s20   ;;  %s699_s19 = sphi %s749_s19, %s859_s19   ;;  %s695_s18 = sphi %s747_s18, %s858_s18  }
   0x4   : > { %p26_p0 = scmp.ge.s32.totalorder %s25_s24, 2  ;;  %p44_p1 = scmp.ne.s32.totalorder %s699_s19, %s695_s18 }
   0x5   : > { %p45_p2 = scmp.eq.s32.totalorder %s711_s22, 0  ;;  %s37_s26 = sadd.s32 1, %s699_s19 }
   0x6   : > { %s863_s24 = smov (%p26_p0, %s25_s24), 0  ;;  %p557_p5 = scmp.ge.s32.totalorder %s711_s22, 2 }
   0x7   : > { %p46_p3 = por %p45_p2, %p44_p1  ;;  %s33_s25 = ssub.s32 %s707_s21, %s863_s24 }
   0x8   : > { %p35_p4 = scmp.eq.s32.totalorder %s33_s25, 0  ;;  %192 = sbr.rel (%p557_p5) target bundleno = 22 (0x16), region = 32 }
   0xa   : > { %s783_s27 = scalar_select %p35_p4, %s699_s19, %s37_s26  }
   0xf   : > { %195 = sbr.rel (!%p46_p3) target bundleno = 22 (0x16), region = 36  ;;  %s197_s28 = sand.u32 (%p46_p3), 1, %s699_s19  }
  0x10   : > { %s559_s29 = sshll.u32 (%p46_p3), %s707_s21, 3  ;;  %s558_s30 = sshll.u32 (%p46_p3), %s197_s28, 4 }
  0x11   : > { %s204_s8 = scalar_lea.vmem (%p46_p3), %s851_s0, %s559_s29  ;;  %s199_s9 = scalar_lea.vmem (%p46_p3), [#allocation3], %s558_s30 }
  0x12   : > { %v234_v0 = vld [vmem:[%s204_s8] sm:$0xff] (%p46_p3)  ;;  %v236_v1 = vld [vmem:[%s204_s8 + $0x10] sm:$0xff] (%p46_p3) }
  0x13   : > { %235 = vst [vmem:[%s199_s9] sm:$0xff] (%p46_p3), %v234_v0  ;;  %237 = vst [vmem:[%s199_s9 + $0x8] sm:$0xff] (%p46_p3), %v236_v1 }
  0x16 PF: > { %p560_p6 = scmp.ge.s32.totalorder %s711_s22, 1  ;;  %p242_p7 = scmp.lt.s32.totalorder %s711_s22, 3 }
  0x18   : > { %p243_p8 = pnand %p560_p6, %p242_p7 }
  0x19   : > { %s249_s10 = sand.u32 (!%p243_p8), 1, %s695_s18   ;;  %p562_p9 = scmp.ne.s32.totalorder (!%p243_p8), %s703_s20, 0 }
  0x1a   : > { %246 = sbr.rel (%p243_p8) target bundleno = 688 (0x2b0), region = 74  ;;  %s561_s11 = sshll.u32 (!%p243_p8), %s249_s10, 4 }
  0x1b   : > { %s251_s12 = scalar_lea.vmem (!%p243_p8), [#allocation3], %s561_s11 }
  0x21   : > { %275 = sbr.rel (%p562_p9) target bundleno = 40 (0x28), region = 82  ;;  %vm276_vm0 = vcmask (!%p562_p9), 58368   ;;  %v713_v2 = vmov (!%p562_p9), 0.0  }
  0x22   : > { %277 = vst.msk [vmem:[#allocation2] sm:$0x3] (!%p562_p9), %vm276_vm0, %v713_v2 }
  0x28 PF: > { %v278_v3 = vld [vmem:[%s251_s12] sm:$0xff]  ;;  %v279_v4 = vld [vmem:[%s251_s12 + $0x8] sm:$0xff]  ;;  %v287_v5 = vlaneseq  ;;  %vm297_vm1 = vcmask 1041409   ;;  %vm301_vm2 = vcmask 58368   ;;  %p563_p10 = scmp.ne.s32.totalorder %s703_s20, 1 }
  0x29   : > { %281 = vadd.xlane.f32.xlu0 %v278_v3  ;;  %v280_v12 = vld [vmem:[#allocation2] sm:$0x3]  ;;  %vm317_vm3 = vcmask (!%p563_p10), 64512   ;;  %v714_v18 = vmov (!%p563_p10), 0.0   ;;  %vm715_vm4 = vmmov (!%p563_p10), 0   ;;  %vm404_vm5 = vcmask (!%p563_p10), 1041408  }
  0x2a   : > { %v288_v6 = vand.u32 127, %v287_v5  ;;  %v290_v7 = vshrl.u32 %v287_v5, 7  ;;  %v309_v16 = vld [vmem:[%s852_s1] sm:$0xff] (!%p563_p10)  ;;  %579 = vmatprep.subr.mxu0 (!%p563_p10), %v714_v18  ;;  %581 = vmatprep.mubr.msk.f32.mxu0 (!%p563_p10), %vm715_vm4, %v714_v18  ;;  %vm400_vm6 = vcmask (!%p563_p10), 15360   ;;  %vm486_vm7 = vcmask (!%p563_p10), 25600  }
  0x2b   : > { %580 = vmatpush3.msra.mxu0 (!%p563_p10), %v309_v16  ;;  %584 = vmatprep.subr.mxu1 (!%p563_p10), %v714_v18  ;;  %v392_v20 = vld [vmem:[%s854_s3] sm:$0x3] (!%p563_p10) }
  0x2c   : > { %v291_v9 = vsub.s32 %v288_v6, %v290_v7  ;;  %586 = vmatprep.mubr.msk.f32.mxu1 (!%p563_p10), %vm715_vm4, %v714_v18  ;;  %585 = vmatpush3.msk.msra.mxu1 (!%p563_p10), %vm404_vm5, %v392_v20  ;;  %v564_v21 = vld [vmem:[%s853_s2] ss:$0 sm:$0xff] (!%p563_p10) }
  0x2d   : > { %283 = vadd.xlane.f32.xlu0 %v279_v4  ;;  %v566_v26 = vld [vmem:[%s855_s4] ss:$0 sm:$0xff] (!%p563_p10) }
  0xb6   : > { %v282_v8 = vpop.xlane.xlu0 %281 }
  0xb7   : > { %v292_v11 = vrot.slane %v282_v8, %v291_v9 }
  0xba   : > { %v284_v10 = vpop.xlane.xlu0 %283  ;;  %306 = sbr.rel (%p563_p10) target bundleno = 663 (0x297), region = 86 }
  0xbb   : > { %v296_v13 = vrot.slane %v284_v10, %v291_v9 }
  0xbd   : > { %v298_v14 = vsel %vm297_vm1, %v296_v13, %v292_v11 }
  0xbe   : > { %v300_v15 = vadd.f32 %v298_v14, %v280_v12 }
  0xc0   : > { %302 = vst.msk [vmem:[#allocation2] sm:$0x3] %vm301_vm2, %v300_v15 }
  0xc7   : > { %v307_v17 = vld [vmem:[#allocation2] sm:$0x3] }
  0xc8   : > { %v308_v19 = vmul.f32 0.00390625, %v307_v17 }
  0xca   : > { %582 = vmatmul.mubr.msk.f32.vlgmr.msra.gmra.mrb[0].mxu0 %vm317_vm3, %v308_v19 }
 0x19d   : > { %v387_v22 = vpop.f32.mrb[0].mxu0 }
 0x19e   : > { %v388_v23 = vadd.f32 %v564_v21, %v387_v22  ;;  %v583_v24 = vpop.f32.mrb[1].mxu0 }
 0x1a0   : > { %v391_v25 = vmax.f32 %v388_v23, 0.0 }
 0x1a2   : > { %587 = vmatmul.mubr.msk.f32.vlgmr.msra.gmra.mrb[0].mxu1 %vm400_vm6, %v391_v25 }
 0x275   : > { %v474_v27 = vpop.f32.mrb[0].mxu1 }
 0x276   : > { %v475_v28 = vadd.f32 %v566_v26, %v474_v27  ;;  %v588_v29 = vpop.f32.mrb[1].mxu1 }
 0x278   : > { %v569_v30 = vmul.f32 -1.442695, %v475_v28 }
 0x27a   : > { %639 = vpow2.f32 %v569_v30 }
 0x284   : > { %v640_v31 = vpop.eup %639 }
 0x285   : > { %v481_v32 = vadd.f32 1.0, %v640_v31 }
 0x287   : > { %641 = vrcp.f32 %v481_v32 }
 0x291   : > { %v642_v33 = vpop.eup %641 }
 0x292   : > { %v484_v34 = vmul.f32 2.0, %v642_v33 }
 0x294   : > { %v570_v35 = vadd.f32 -1.0, %v484_v34 }
 0x296   : > { %487 = vst.msk [vmem:[#allocation4] sm:$0x3] %vm486_vm7, %v570_v35 }
 0x297 PF: > { %p810_p11 = scmp.eq.s32.totalorder %s555_s23, 1  ;;  %s716_s28 = smov [#allocation4]  }
 0x298   : > { %s497_s29 = sshll.u32 %s716_s28, 4  ;;  %s498_s29 = int_to_ptr.vmem [resolvable:$true] %s497_s29 }
 0x299   : > { %s643_s30 = scalar_lea.vmem %s498_s29, 32  ;;  %p650_p1 = scmp.lt.s32.totalorder %s498_s29, %s498_s29 }
 0x29a   : > { %p644_p12 = scmp.ne.s32.totalorder %s498_s29, %s643_s30  ;;  %p651_p2 = scmp.lt.s32.totalorder %s643_s30, %s643_s30 }
 0x29c   : > { %p645_p13 = pnand %p644_p12, %p810_p11  ;;  %p652_p3 = por %p651_p2, %p650_p1 }
 0x29e   : > { %p646_p0 = pneg %p645_p13 }
 0x2a0   : > { %p653_p4 = pnand %p652_p3, %p646_p0 }
 0x2a2   : > { %656 = shalt.err (!%p653_p4)
}
 0x2a3   : > { %s657_s23 = scalar_lea.hbm %s856_s5, 32 }
 0x2a4   : > { %p658_p5 = scmp.ne.s32.totalorder %s856_s5, %s657_s23  ;;  %p663_p8 = scmp.lt.u32.totalorder %s657_s23, %s856_s5 }
 0x2a6   : > { %p659_p6 = pnand %p658_p5, %p810_p11 }
 0x2a8   : > { %p660_p7 = pneg %p659_p6 }
 0x2aa   : > { %p665_p9 = pnand %p663_p8, %p660_p7 }
 0x2ac   : > { %668 = shalt.err (!%p665_p9)
}
 0x2ad   : > { %590 = dma.vmem_to_hbm [thread:$0]  (%p810_p11), %s498_s29, 32, %s856_s5, [#allocation5]  }
 0x2ae   : > { %690 = dma.done.wait (%p810_p11), [#allocation5], 32  }
 0x2af   : > { %692 = vsyncadd (%p810_p11), [#allocation5], 4294967264 }
 0x2b0 PF: > { %s16_s22 = sadd.s32 1, %s711_s22   ;;  %s858_s18 = smov %s699_s19 }
 0x2b1   : > { %p13_p10 = scmp.ge.s32.totalorder %s16_s22, 4   ;;  %s859_s19 = smov %s783_s27 }
 0x2b2   : > { %s860_s20 = smov %s707_s21  ;;  %s861_s21 = smov %s863_s24 }
 0x2b3   :  { %15 = sbr.rel (!%p13_p10) target bundleno = 3 (0x3), region = 119 }
 0x2ba   :  { %510 = vsyncpa [#allocation5], 1 }
 0x2bb   :  { %512 = vsyncpa [#allocation5 + $0x1], 1 }

</bundles_post_ra>
